<compile_context>
chip_gen: v6e
topology: v6e:2x2x1
jax: 0.10.0
libtpu: 0.0.40
codegen_flags: <defaults>
</compile_context>

<pallas_src>
import functools

import jax
import jax.numpy as jnp
from jax import lax
from jax.experimental import pallas as pl
from jax.experimental.pallas import tpu as pltpu

LANES = 128
SUBLANES = 8
# Sub-block streamed through the VPU/EUP inside the kernel: 64 rows = 8 f32
# vregs per operand -> enough independent work per dependent op to hide
# EUP/VPU latency while keeping ~5 live (64,128) arrays under 64 vregs.
SUB_ROWS = 64
# ~4 MiB of input (both operands combined) per grid step -> 2 MiB per input
# pipeline buffer for f32 (4096 rows), 8192 rows for bf16.
TARGET_TILE_BYTES = 4 * 1024 * 1024
VMEM_LIMIT_BYTES = 32 * 1024 * 1024  # >= every generation's default limit


def _bce_elementwise(x, t, logits):
    """Element-wise binary cross entropy in f32, matching PyTorch semantics."""
    if logits:
        # F.binary_cross_entropy_with_logits:
        #   max(x,0) - x*t + log(1 + exp(-|x|))
        return jnp.maximum(x, 0.0) - x * t + jnp.log1p(jnp.exp(-jnp.abs(x)))
    else:
        # F.binary_cross_entropy clamps the log terms at -100.
        log_x = jnp.maximum(jnp.log(x), -100.0)
        log_1mx = jnp.maximum(jnp.log(1.0 - x), -100.0)
        return -(t * log_x + (1.0 - t) * log_1mx)


def _pow(base, gamma):
    """base ** gamma; small integer gamma lowers to VPU multiplies (no EUP)."""
    g = float(gamma)
    if g == round(g) and 0 <= g <= 8:
        gi = int(round(g))
        if gi == 0:
            return jnp.ones_like(base)
        out = base
        for _ in range(gi - 1):
            out = out * base
        return out
    return base ** g


def _focal(x, t, alpha, gamma, logits):
    bce = _bce_elementwise(x, t, logits)
    pt = jnp.exp(-bce)
    return alpha * _pow(1.0 - pt, gamma) * bce


def _focal_reduce_kernel(x_ref, t_ref, o_ref, *, alpha, gamma, logits,
                         n_rows, tile_rows, sub_rows):
    i = pl.program_id(0)
    base_row = i * tile_rows              # row index, no int32 overflow risk
    n_sub = tile_rows // sub_rows

    def body(s, acc):
        r0 = s * sub_rows
        start = pl.multiple_of(r0, sub_rows)
        x = x_ref[pl.ds(start, sub_rows), :].astype(jnp.float32)
        t = t_ref[pl.ds(start, sub_rows), :].astype(jnp.float32)
        fl = _focal(x, t, alpha, gamma, logits)
        # Fold (sub_rows,128) -> (8,128): register-tile aligned, pure VPU adds.
        part = jnp.sum(fl.reshape(-1, SUBLANES, LANES), axis=0)
        # n_rows is a multiple of sub_rows, so each sub-block is either fully
        # valid (in-bounds; wrapper padding there is neutral -> contributes 0)
        # or fully OOB garbage from the ragged final grid block.  A scalar
        # row-threshold select kills the latter (select blocks NaN/Inf from
        # log()/exp() on garbage) -- this select is load-bearing.
        valid = (base_row + r0) < n_rows
        return acc + jnp.where(valid, part, 0.0)

    acc = lax.fori_loop(0, n_sub, body,
                        jnp.zeros((SUBLANES, LANES), jnp.float32))
    o_ref[...] = acc


def _focal_map_kernel(x_ref, t_ref, o_ref, *, alpha, gamma, logits,
                      tile_rows, sub_rows):
    n_sub = tile_rows // sub_rows

    def body(s, carry):
        start = pl.multiple_of(s * sub_rows, sub_rows)
        x = x_ref[pl.ds(start, sub_rows), :].astype(jnp.float32)
        t = t_ref[pl.ds(start, sub_rows), :].astype(jnp.float32)
        fl = _focal(x, t, alpha, gamma, logits)
        o_ref[pl.ds(start, sub_rows), :] = fl.astype(o_ref.dtype)
        return carry

    lax.fori_loop(0, n_sub, body, 0)


class FocalLoss:
    """JAX/Pallas re-implementation of the PyTorch FocalLoss module."""

    def __init__(self, alpha=1, gamma=2, logits=False, reduce=True):
        self.alpha = float(alpha)
        self.gamma = float(gamma)
        self.logits = bool(logits)
        self.reduce = bool(reduce)

    def __call__(self, inputs, targets):
        orig_shape = inputs.shape
        out_dtype = inputs.dtype

        x = jnp.ravel(inputs)
        t = jnp.ravel(targets)
        n_valid = int(x.shape[0])

        # Pad to a multiple of SUB_ROWS*128 elements with NEUTRAL values whose
        # focal loss is exactly 0, so in-bounds padding never needs a mask:
        #   logits=False: x=1, t=1 -> bce = 0 -> fl = 0
        #   logits=True : x=200, t=1 -> exp(-200) underflows -> bce = 0 -> fl = 0
        align = SUB_ROWS * LANES
        n_pad = (-n_valid) % align
        if n_pad:
            pad_x = 200.0 if self.logits else 1.0
            x = jnp.pad(x, (0, n_pad), constant_values=pad_x)
            t = jnp.pad(t, (0, n_pad), constant_values=1.0)
        n_rows = (n_valid + n_pad) // LANES          # multiple of SUB_ROWS
        x2 = x.reshape(n_rows, LANES)
        t2 = t.reshape(n_rows, LANES)

        # Tile rows from the input byte-width: ~4 MiB of input per grid step
        # (2 MiB per double-buffered input), so bf16 inputs get 2x the rows.
        bytes_per_row = (x2.dtype.itemsize + t2.dtype.itemsize) * LANES
        cap = max(SUB_ROWS,
                  (TARGET_TILE_BYTES // bytes_per_row) // SUB_ROWS * SUB_ROWS)
        tile_rows = min(cap, n_rows)                 # multiple of SUB_ROWS
        n_tiles = pl.cdiv(n_rows, tile_rows)
        n_elems = n_rows * LANES

        in_bytes = n_elems * (x2.dtype.itemsize + t2.dtype.itemsize)
        flops = 12 * n_elems
        transcendentals = 3 * n_elems

        in_specs = [
            pl.BlockSpec((tile_rows, LANES), lambda i: (i, 0)),
            pl.BlockSpec((tile_rows, LANES), lambda i: (i, 0)),
        ]
        compiler_params = pltpu.CompilerParams(
            dimension_semantics=("parallel",),
            vmem_limit_bytes=VMEM_LIMIT_BYTES)

        if self.reduce:
            kernel = functools.partial(
                _focal_reduce_kernel,
                alpha=self.alpha, gamma=self.gamma, logits=self.logits,
                n_rows=n_rows, tile_rows=tile_rows, sub_rows=SUB_ROWS)
            partials = pl.pallas_call(
                kernel,
                out_shape=jax.ShapeDtypeStruct(
                    (n_tiles * SUBLANES, LANES), jnp.float32),
                grid_spec=pltpu.PrefetchScalarGridSpec(
                    num_scalar_prefetch=0,
                    grid=(n_tiles,),
                    in_specs=in_specs,
                    out_specs=pl.BlockSpec((SUBLANES, LANES),
                                           lambda i: (i, 0)),
                ),
                compiler_params=compiler_params,
                cost_estimate=pl.CostEstimate(
                    flops=flops,
                    transcendentals=transcendentals,
                    bytes_accessed=in_bytes + n_tiles * SUBLANES * LANES * 4),
            )(x2, t2)
            # Tiny final reduction (n_tiles * 1024 floats) + mean outside the
            # kernel so the grid stays embarrassingly parallel.
            return jnp.sum(partials) / jnp.float32(n_valid)
        else:
            kernel = functools.partial(
                _focal_map_kernel,
                alpha=self.alpha, gamma=self.gamma, logits=self.logits,
                tile_rows=tile_rows, sub_rows=SUB_ROWS)
            out = pl.pallas_call(
                kernel,
                out_shape=jax.ShapeDtypeStruct((n_rows, LANES), out_dtype),
                grid_spec=pltpu.PrefetchScalarGridSpec(
                    num_scalar_prefetch=0,
                    grid=(n_tiles,),
                    in_specs=in_specs,
                    out_specs=pl.BlockSpec((tile_rows, LANES),
                                           lambda i: (i, 0)),
                ),
                compiler_params=compiler_params,
                cost_estimate=pl.CostEstimate(
                    flops=flops,
                    transcendentals=transcendentals,
                    bytes_accessed=in_bytes
                    + n_elems * jnp.dtype(out_dtype).itemsize),
            )(x2, t2)
            return out.reshape(-1)[:n_valid].reshape(orig_shape)


def _reference_focal_loss(inputs, targets, alpha=1.0, gamma=2.0,
                          logits=False, reduce=True):
    x = inputs.astype(jnp.float32)
    t = targets.astype(jnp.float32)
    bce = _bce_elementwise(x, t, logits)
    pt = jnp.exp(-bce)
    fl = alpha * (1.0 - pt) ** gamma * bce
    return jnp.mean(fl) if reduce else fl


if __name__ == "__main__":
    key = jax.random.PRNGKey(0)
    k1, k2, k3 = jax.random.split(key, 3)

    # NCHW inputs; probabilities in (0,1) since logits=False by default.
    shape = (2, 4, 16, 16)
    probs = jax.nn.sigmoid(jax.random.normal(k1, shape, jnp.float32))
    raw_logits = jax.random.normal(k3, shape, jnp.float32)
    targets = jax.random.bernoulli(k2, 0.5, shape).astype(jnp.float32)

    # reduce=True (default) path.
    loss = FocalLoss(alpha=1, gamma=2, logits=False, reduce=True)(probs, targets)
    loss = jax.block_until_ready(loss)
    ref = _reference_focal_loss(probs, targets)
    assert jnp.allclose(loss, ref, rtol=1e-5, atol=1e-6), (loss, ref)

    # reduce=False path (dtype-preserving, like PyTorch).
    fl_map = FocalLoss(alpha=1, gamma=2, logits=False, reduce=False)(probs, targets)
    fl_map = jax.block_until_ready(fl_map)
    ref_map = _reference_focal_loss(probs, targets, reduce=False)
    assert fl_map.shape == shape and fl_map.dtype == probs.dtype
    assert jnp.allclose(fl_map, ref_map, rtol=1e-5, atol=1e-6)

    # logits=True path.
    loss_lg = FocalLoss(alpha=0.25, gamma=2, logits=True, reduce=True)(
        raw_logits, targets)
    loss_lg = jax.block_until_ready(loss_lg)
    ref_lg = _reference_focal_loss(raw_logits, targets, alpha=0.25, gamma=2.0,
                                   logits=True)
    assert jnp.allclose(loss_lg, ref_lg, rtol=1e-5, atol=1e-6), (loss_lg, ref_lg)

    print("KERNEL_OK")
</pallas_src>

<mosaic_0001>
module attributes {stable_mosaic.version = 11 : i64} {
  func.func @_focal_reduce_kernel(%arg0: i32, %arg1: memref<64x128xf32, #tpu.memory_space<vmem>>, %arg2: memref<64x128xf32, #tpu.memory_space<vmem>>, %arg3: memref<8x128xf32, #tpu.memory_space<vmem>>) attributes {dimension_semantics = [#tpu.dimension_semantics<parallel>], iteration_bounds = array<i64: 1>, scalar_prefetch = 0 : i64, scratch_operands = 0 : i64, tpu.core_type = #tpu.core_type<tc>, window_params = [{transform_indices = @transform_0, window_bounds = array<i64: 64, 128>}, {transform_indices = @transform_1, window_bounds = array<i64: 64, 128>}, {transform_indices = @transform_2, window_bounds = array<i64: 8, 128>}]} {
    %c64_i32 = arith.constant 64 : i32
    %0 = arith.muli %arg0, %c64_i32 : i32
    %cst = arith.constant 0.000000e+00 : f32
    %1 = vector.broadcast %cst : f32 to vector<8x128xf32>
    %c0_i32 = arith.constant 0 : i32
    %c64_i32_0 = arith.constant 64 : i32
    %2 = arith.muli %c0_i32, %c64_i32_0 : i32
    %3 = tpu.assume_multiple %2, 64 : i32
    %4 = arith.index_cast %3 : i32 to index
    %c0 = arith.constant 0 : index
    %5 = vector.load %arg1[%4, %c0] : memref<64x128xf32, #tpu.memory_space<vmem>>, vector<64x128xf32>
    %6 = arith.index_cast %3 : i32 to index
    %c0_1 = arith.constant 0 : index
    %7 = vector.load %arg2[%6, %c0_1] : memref<64x128xf32, #tpu.memory_space<vmem>>, vector<64x128xf32>
    %8 = math.log %5 : vector<64x128xf32>
    %cst_2 = arith.constant -1.000000e+02 : f32
    %9 = vector.broadcast %cst_2 : f32 to vector<64x128xf32>
    %10 = arith.maximumf %8, %9 : vector<64x128xf32>
    %cst_3 = arith.constant 1.000000e+00 : f32
    %11 = vector.broadcast %cst_3 : f32 to vector<64x128xf32>
    %12 = arith.subf %11, %5 : vector<64x128xf32>
    %13 = math.log %12 : vector<64x128xf32>
    %cst_4 = arith.constant -1.000000e+02 : f32
    %14 = vector.broadcast %cst_4 : f32 to vector<64x128xf32>
    %15 = arith.maximumf %13, %14 : vector<64x128xf32>
    %16 = arith.mulf %7, %10 : vector<64x128xf32>
    %cst_5 = arith.constant 1.000000e+00 : f32
    %17 = vector.broadcast %cst_5 : f32 to vector<64x128xf32>
    %18 = arith.subf %17, %7 : vector<64x128xf32>
    %19 = arith.mulf %18, %15 : vector<64x128xf32>
    %20 = arith.addf %16, %19 : vector<64x128xf32>
    %cst_6 = arith.constant 0.000000e+00 : f32
    %21 = vector.broadcast %cst_6 : f32 to vector<64x128xf32>
    %22 = arith.subf %21, %20 : vector<64x128xf32>
    %cst_7 = arith.constant 0.000000e+00 : f32
    %23 = vector.broadcast %cst_7 : f32 to vector<64x128xf32>
    %24 = arith.subf %23, %22 : vector<64x128xf32>
    %25 = math.exp %24 : vector<64x128xf32>
    %cst_8 = arith.constant 1.000000e+00 : f32
    %26 = vector.broadcast %cst_8 : f32 to vector<64x128xf32>
    %27 = arith.subf %26, %25 : vector<64x128xf32>
    %28 = arith.mulf %27, %27 : vector<64x128xf32>
    %cst_9 = arith.constant 1.000000e+00 : f32
    %29 = vector.broadcast %cst_9 : f32 to vector<64x128xf32>
    %30 = arith.mulf %29, %28 : vector<64x128xf32>
    %31 = arith.mulf %30, %22 : vector<64x128xf32>
    %32 = vector.shape_cast %31 : vector<64x128xf32> to vector<8x8x128xf32>
    %cst_10 = arith.constant dense<0.000000e+00> : vector<8x128xf32>
    %33 = vector.multi_reduction <add>, %32, %cst_10 [0] : vector<8x8x128xf32> to vector<8x128xf32>
    %34 = arith.addi %0, %2 : i32
    %c64_i32_11 = arith.constant 64 : i32
    %35 = arith.cmpi slt, %34, %c64_i32_11 : i32
    %cst_12 = arith.constant 0.000000e+00 : f32
    %36 = vector.broadcast %cst_12 : f32 to vector<8x128xf32>
    %37 = arith.select %35, %33, %36 : vector<8x128xf32>
    %38 = arith.addf %1, %37 : vector<8x128xf32>
    %c1_i32 = arith.constant 1 : i32
    %c0_13 = arith.constant 0 : index
    %c0_14 = arith.constant 0 : index
    %39 = vector.load %arg3[%c0_13, %c0_14] : memref<8x128xf32, #tpu.memory_space<vmem>>, vector<8x128xf32>
    tpu.vector_store %arg3[%c0_13, %c0_14], %38 {strides = array<i32>} : memref<8x128xf32, #tpu.memory_space<vmem>>, vector<8x128xf32>,
    return
  }
  func.func @transform_0(%arg0: i32) -> (i32, i32) {
    %c0_i32 = arith.constant 0 : i32
    %c0_i32_0 = arith.constant 0 : i32
    return %arg0, %c0_i32 : i32, i32
  }
  func.func @transform_1(%arg0: i32) -> (i32, i32) {
    %c0_i32 = arith.constant 0 : i32
    %c0_i32_0 = arith.constant 0 : i32
    return %arg0, %c0_i32 : i32, i32
  }
  func.func @transform_2(%arg0: i32) -> (i32, i32) {
    %c0_i32 = arith.constant 0 : i32
    %c0_i32_0 = arith.constant 0 : i32
    return %arg0, %c0_i32 : i32, i32
  }
}

</mosaic_0001>

<bundles_post_ra>
// kernel: tpu_custom_call.1
= control target key start
LH: loop header
LB: loop body
LE: loop exit
PB: predicated region body
PF: predicated region fallthrough
CT: control target
= control target key end

     0   :  { %7 = vsyncpa [#allocation3], 0  ;;  %s425_s0 = inlined_call_operand.hbm [shape: f32[64,128], index: 0, kind: input, shape index: {}]   ;;  %s426_s1 = inlined_call_operand.hbm [shape: f32[64,128], index: 1, kind: input, shape index: {}]   ;;  %s427_s2 = inlined_call_operand.hbm [shape: f32[8,128], index: 2, kind: output, shape index: {}]  }
   0x1   :  { %8 = vsyncpa [#allocation6], 0 }
   0x2   :  { %9 = vsyncpa [#allocation4], 0  ;;  %s350_s9 = smov [#allocation2]  }
   0x3   :  { %s15_s10 = sshll.u32 %s350_s9, 4  ;;  %s16_s10 = int_to_ptr.vmem [resolvable:$true] %s15_s10 }
   0x4   :  { %s292_s11 = scalar_lea.vmem %s16_s10, 1024  ;;  %p297_p1 = scmp.lt.s32.totalorder %s16_s10, %s16_s10 }
   0x5   :  { %p293_p0 = scmp.ne.s32.totalorder %s16_s10, %s292_s11  ;;  %p298_p2 = scmp.lt.s32.totalorder %s292_s11, %s292_s11 }
   0x7   :  { %p299_p3 = por %p298_p2, %p297_p1 }
   0x9   :  { %p300_p4 = pnand %p299_p3, %p293_p0 }
   0xb   :  { %303 = shalt.err (!%p300_p4)
}
   0xc   :  { %s351_s12 = smov 128   ;;  %s352_s13 = smov 8  }
   0xd   :  { %21 = dma.hbm_to_vmem [thread:$0]  %s425_s0, 1024, %s16_s10, [#allocation3], %s351_s12, %s351_s12, %s352_s13  }
   0xe   :  { %s353_s16 = smov [#allocation5]  }
   0xf   :  { %s27_s17 = sshll.u32 %s353_s16, 4  ;;  %s28_s17 = int_to_ptr.vmem [resolvable:$true] %s27_s17 }
  0x10   :  { %s312_s18 = scalar_lea.vmem %s28_s17, 1024  ;;  %p317_p6 = scmp.lt.s32.totalorder %s28_s17, %s28_s17 }
  0x11   :  { %p313_p5 = scmp.ne.s32.totalorder %s28_s17, %s312_s18  ;;  %p318_p7 = scmp.lt.s32.totalorder %s312_s18, %s312_s18 }
  0x13   :  { %p319_p8 = por %p318_p7, %p317_p6 }
  0x15   :  { %p320_p9 = pnand %p319_p8, %p313_p5 }
  0x17   :  { %323 = shalt.err (!%p320_p9)
}
  0x18   :  { %33 = dma.hbm_to_vmem [thread:$0]  %s426_s1, 1024, %s28_s17, [#allocation6], %s351_s12, %s351_s12, %s352_s13  }
  0x19   :  { %344 = dma.done.wait [#allocation3], 1024  }
  0x1a   :  { %345 = vsyncadd [#allocation3], 4294966272 }
  0x1b   :  { %346 = dma.done.wait [#allocation6], 1024  }
  0x1c   :  { %347 = vsyncadd [#allocation6], 4294966272  ;;  %v41_v0 = vld [vmem:[#allocation2] sm:$0xff]  ;;  %v42_v1 = vld [vmem:[#allocation2 + $0x8] sm:$0xff]  ;;  %s354_s0 = smov [#allocation7]  }
  0x1d   :  { %236 = vlog2.f32 %v41_v0  ;;  %v43_v2 = vld [vmem:[#allocation2 + $0x10] sm:$0xff]  ;;  %v44_v3 = vld [vmem:[#allocation2 + $0x18] sm:$0xff]  ;;  %v45_v4 = vld [vmem:[#allocation2 + $0x20] sm:$0xff]  ;;  %v81_v6 = vsub.f32 1.0, %v41_v0  ;;  %v82_v8 = vsub.f32 1.0, %v42_v1  ;;  %s221_s1 = sshll.u32 %s354_s0, 4  ;;  %s222_s1 = int_to_ptr.vmem [resolvable:$true] %s221_s1 }
  0x1e   :  { %238 = vlog2.f32 %v42_v1  ;;  %v46_v5 = vld [vmem:[#allocation2 + $0x28] sm:$0xff]  ;;  %v47_v7 = vld [vmem:[#allocation2 + $0x30] sm:$0xff]  ;;  %v48_v9 = vld [vmem:[#allocation2 + $0x38] sm:$0xff]  ;;  %v83_v10 = vsub.f32 1.0, %v43_v2  ;;  %v84_v11 = vsub.f32 1.0, %v44_v3  ;;  %v85_v12 = vsub.f32 1.0, %v45_v4  ;;  %p329_p11 = scmp.lt.s32.totalorder %s222_s1, %s222_s1 }
  0x1f   :  { %240 = vlog2.f32 %v43_v2  ;;  %v86_v13 = vsub.f32 1.0, %v46_v5  ;;  %v87_v14 = vsub.f32 1.0, %v47_v7  ;;  %v88_v15 = vsub.f32 1.0, %v48_v9  ;;  %v49_v18 = vld [vmem:[#allocation5] sm:$0xff]  ;;  %v376_v20 = vld [vmem:[#allocation5 + $0x8] sm:$0xff]  ;;  %v378_v21 = vld [vmem:[#allocation5 + $0x10] sm:$0xff] }
  0x20   :  { %242 = vlog2.f32 %v44_v3  ;;  %v380_v25 = vld [vmem:[#allocation5 + $0x18] sm:$0xff]  ;;  %v382_v28 = vld [vmem:[#allocation5 + $0x20] sm:$0xff]  ;;  %v121_v30 = vsub.f32 1.0, %v49_v18  ;;  %v384_v32 = vld [vmem:[#allocation5 + $0x28] sm:$0xff]  ;;  %v122_v35 = vsub.f32 1.0, %v376_v20  ;;  %v123_v36 = vsub.f32 1.0, %v378_v21 }
  0x21   :  { %244 = vlog2.f32 %v45_v4  ;;  %v386_v33 = vld [vmem:[#allocation5 + $0x30] sm:$0xff]  ;;  %v390_v38 = vld [vmem:[#allocation5 + $0x38] sm:$0xff]  ;;  %v124_v42 = vsub.f32 1.0, %v380_v25  ;;  %v125_v47 = vsub.f32 1.0, %v382_v28  ;;  %v126_v52 = vsub.f32 1.0, %v384_v32  ;;  %s324_s21 = scalar_lea.vmem %s222_s1, 128 }
  0x22   :  { %246 = vlog2.f32 %v46_v5  ;;  %v127_v56 = vsub.f32 1.0, %v386_v33  ;;  %v128_v57 = vsub.f32 1.0, %v390_v38  ;;  %p325_p10 = scmp.ne.s32.totalorder %s222_s1, %s324_s21  ;;  %p330_p12 = scmp.lt.s32.totalorder %s324_s21, %s324_s21 }
  0x23   :  { %248 = vlog2.f32 %v47_v7 }
  0x24   :  { %250 = vlog2.f32 %v48_v9  ;;  %p331_p13 = por %p330_p12, %p329_p11 }
  0x25   :  { %252 = vlog2.f32 %v81_v6 }
  0x26   :  { %254 = vlog2.f32 %v82_v8  ;;  %p332_p0 = pnand %p331_p13, %p325_p10 }
  0x27   :  { %256 = vlog2.f32 %v83_v10 }
  0x28   :  { %258 = vlog2.f32 %v84_v11 }
  0x29   :  { %260 = vlog2.f32 %v85_v12 }
  0x2a   :  { %v237_v16 = vpop.eup %236  ;;  %262 = vlog2.f32 %v86_v13 }
  0x2b   :  { %v239_v17 = vpop.eup %238  ;;  %264 = vlog2.f32 %v87_v14  ;;  %v58_v22 = vmul.f32 0.6931472, %v237_v16 }
  0x2c   :  { %v241_v19 = vpop.eup %240  ;;  %v60_v23 = vmul.f32 0.6931472, %v239_v17  ;;  %266 = vlog2.f32 %v88_v15 }
  0x2d   :  { %v243_v24 = vpop.eup %242  ;;  %v62_v26 = vmul.f32 0.6931472, %v241_v19  ;;  %v73_v40 = vmax.f32 %v58_v22, -100.0 }
  0x2e   :  { %v245_v27 = vpop.eup %244  ;;  %v64_v29 = vmul.f32 0.6931472, %v243_v24  ;;  %v74_v41 = vmax.f32 %v60_v23, -100.0 }
  0x2f   :  { %v247_v31 = vpop.eup %246  ;;  %v66_v34 = vmul.f32 0.6931472, %v245_v27  ;;  %v75_v45 = vmax.f32 %v62_v26, -100.0  ;;  %v113_v61 = vmul.f32 %v73_v40, %v49_v18 }
  0x30   :  { %v249_v37 = vpop.eup %248  ;;  %v68_v39 = vmul.f32 0.6931472, %v247_v31  ;;  %v76_v46 = vmax.f32 %v64_v29, -100.0  ;;  %v114_v62 = vmul.f32 %v74_v41, %v376_v20 }
  0x31   :  { %v251_v43 = vpop.eup %250  ;;  %v70_v44 = vmul.f32 0.6931472, %v249_v37  ;;  %v77_v50 = vmax.f32 %v66_v34, -100.0  ;;  %v115_v2 = vmul.f32 %v75_v45, %v378_v21 }
  0x32   :  { %v253_v48 = vpop.eup %252  ;;  %v72_v49 = vmul.f32 0.6931472, %v251_v43  ;;  %v78_v51 = vmax.f32 %v68_v39, -100.0  ;;  %v116_v3 = vmul.f32 %v76_v46, %v380_v25 }
  0x33   :  { %v255_v53 = vpop.eup %254  ;;  %v79_v54 = vmax.f32 %v70_v44, -100.0  ;;  %v90_v55 = vmul.f32 0.6931472, %v253_v48  ;;  %v117_v7 = vmul.f32 %v77_v50, %v382_v28 }
  0x34   :  { %v257_v58 = vpop.eup %256  ;;  %v80_v59 = vmax.f32 %v72_v49, -100.0  ;;  %v92_v60 = vmul.f32 0.6931472, %v255_v53  ;;  %v118_v8 = vmul.f32 %v78_v51, %v384_v32 }
  0x35   :  { %v259_v63 = vpop.eup %258  ;;  %v94_v0 = vmul.f32 0.6931472, %v257_v58  ;;  %v105_v1 = vmax.f32 %v90_v55, -100.0  ;;  %v119_v12 = vmul.f32 %v79_v54, %v386_v33 }
  0x36   :  { %v261_v4 = vpop.eup %260  ;;  %v96_v5 = vmul.f32 0.6931472, %v259_v63  ;;  %v106_v6 = vmax.f32 %v92_v60, -100.0  ;;  %v120_v17 = vmul.f32 %v80_v59, %v390_v38 }
  0x37   :  { %v263_v9 = vpop.eup %262  ;;  %v98_v10 = vmul.f32 0.6931472, %v261_v4  ;;  %v107_v11 = vmax.f32 %v94_v0, -100.0  ;;  %v129_v13 = vmul.f32 %v121_v30, %v105_v1 }
  0x38   :  { %v265_v14 = vpop.eup %264  ;;  %v100_v15 = vmul.f32 0.6931472, %v263_v9  ;;  %v108_v16 = vmax.f32 %v96_v5, -100.0  ;;  %v130_v18 = vmul.f32 %v122_v35, %v106_v6 }
  0x39   :  { %v267_v19 = vpop.eup %266  ;;  %v102_v20 = vmul.f32 0.6931472, %v265_v14  ;;  %v109_v21 = vmax.f32 %v98_v10, -100.0  ;;  %v131_v22 = vmul.f32 %v123_v36, %v107_v11  ;;  %v404_v23 = vadd.f32 %v129_v13, %v113_v61 }
  0x3a   :  { %v104_v24 = vmul.f32 0.6931472, %v267_v19  ;;  %v110_v25 = vmax.f32 %v100_v15, -100.0  ;;  %v132_v26 = vmul.f32 %v124_v42, %v108_v16  ;;  %v406_v27 = vadd.f32 %v130_v18, %v114_v62 }
  0x3b   :  { %v111_v28 = vmax.f32 %v102_v20, -100.0  ;;  %v133_v29 = vmul.f32 %v125_v47, %v109_v21  ;;  %v408_v30 = vadd.f32 %v131_v22, %v115_v2  ;;  %v145_v31 = vsub.f32 0.0, %v404_v23 }
  0x3c   :  { %v112_v32 = vmax.f32 %v104_v24, -100.0  ;;  %v134_v33 = vmul.f32 %v126_v52, %v110_v25  ;;  %v411_v34 = vadd.f32 %v132_v26, %v116_v3  ;;  %v146_v35 = vsub.f32 0.0, %v406_v27 }
  0x3d   :  { %v135_v36 = vmul.f32 %v127_v56, %v111_v28  ;;  %v414_v37 = vadd.f32 %v133_v29, %v117_v7  ;;  %v147_v38 = vsub.f32 0.0, %v408_v30  ;;  %v153_v39 = vsub.f32 0.0, %v145_v31 }
  0x3e   :  { %v136_v40 = vmul.f32 %v128_v57, %v112_v32  ;;  %v417_v41 = vadd.f32 %v134_v33, %v118_v8  ;;  %v148_v42 = vsub.f32 0.0, %v411_v34  ;;  %v154_v43 = vsub.f32 0.0, %v146_v35 }
  0x3f   :  { %v143_v44 = vadd.f32 %v135_v36, %v119_v12  ;;  %v149_v45 = vsub.f32 0.0, %v414_v37  ;;  %v155_v46 = vsub.f32 0.0, %v147_v38  ;;  %v161_v47 = vmul.f32 1.442695, %v153_v39 }
  0x40   :  { %v144_v48 = vadd.f32 %v136_v40, %v120_v17  ;;  %v150_v49 = vsub.f32 0.0, %v417_v41  ;;  %v156_v50 = vsub.f32 0.0, %v148_v42  ;;  %v163_v51 = vmul.f32 1.442695, %v154_v43 }
  0x41   :  { %v151_v52 = vsub.f32 0.0, %v143_v44  ;;  %v157_v53 = vsub.f32 0.0, %v149_v45  ;;  %268 = vpow2.f32 %v161_v47  ;;  %v165_v54 = vmul.f32 1.442695, %v155_v46 }
  0x42   :  { %v152_v55 = vsub.f32 0.0, %v144_v48  ;;  %v158_v56 = vsub.f32 0.0, %v150_v49  ;;  %270 = vpow2.f32 %v163_v51  ;;  %v167_v57 = vmul.f32 1.442695, %v156_v50 }
  0x43   :  { %v159_v58 = vsub.f32 0.0, %v151_v52  ;;  %272 = vpow2.f32 %v165_v54  ;;  %v169_v59 = vmul.f32 1.442695, %v157_v53 }
  0x44   :  { %v160_v60 = vsub.f32 0.0, %v152_v55  ;;  %274 = vpow2.f32 %v167_v57  ;;  %v171_v61 = vmul.f32 1.442695, %v158_v56 }
  0x45   :  { %276 = vpow2.f32 %v169_v59  ;;  %v173_v62 = vmul.f32 1.442695, %v159_v58 }
  0x46   :  { %278 = vpow2.f32 %v171_v61  ;;  %v175_v63 = vmul.f32 1.442695, %v160_v60 }
  0x47   :  { %280 = vpow2.f32 %v173_v62 }
  0x48   :  { %282 = vpow2.f32 %v175_v63 }
  0x4e   :  { %v269_v0 = vpop.eup %268 }
  0x4f   :  { %v271_v1 = vpop.eup %270  ;;  %v177_v2 = vsub.f32 1.0, %v269_v0 }
  0x50   :  { %v273_v3 = vpop.eup %272  ;;  %v178_v4 = vsub.f32 1.0, %v271_v1 }
  0x51   :  { %v275_v5 = vpop.eup %274  ;;  %v179_v6 = vsub.f32 1.0, %v273_v3  ;;  %v185_v7 = vmul.f32 %v177_v2, %v177_v2 }
  0x52   :  { %v277_v8 = vpop.eup %276  ;;  %v180_v9 = vsub.f32 1.0, %v275_v5  ;;  %v186_v10 = vmul.f32 %v178_v4, %v178_v4 }
  0x53   :  { %v279_v11 = vpop.eup %278  ;;  %v181_v12 = vsub.f32 1.0, %v277_v8  ;;  %v187_v13 = vmul.f32 %v179_v6, %v179_v6  ;;  %v193_v14 = vmul.f32 %v185_v7, %v145_v31 }
  0x54   :  { %v281_v15 = vpop.eup %280  ;;  %v182_v16 = vsub.f32 1.0, %v279_v11  ;;  %v188_v17 = vmul.f32 %v180_v9, %v180_v9  ;;  %v194_v18 = vmul.f32 %v186_v10, %v146_v35 }
  0x55   :  { %v283_v19 = vpop.eup %282  ;;  %v183_v20 = vsub.f32 1.0, %v281_v15  ;;  %v189_v21 = vmul.f32 %v181_v12, %v181_v12  ;;  %v195_v22 = vmul.f32 %v187_v13, %v147_v38 }
  0x56   :  { %v184_v23 = vsub.f32 1.0, %v283_v19  ;;  %v190_v24 = vmul.f32 %v182_v16, %v182_v16  ;;  %v196_v25 = vmul.f32 %v188_v17, %v148_v42  ;;  %v201_v26 = vadd.f32 %v194_v18, %v193_v14 }
  0x57   :  { %v191_v27 = vmul.f32 %v183_v20, %v183_v20  ;;  %v197_v28 = vmul.f32 %v189_v21, %v149_v45 }
  0x58   :  { %v202_v29 = vadd.f32 %v201_v26, %v195_v22  ;;  %v192_v30 = vmul.f32 %v184_v23, %v184_v23  ;;  %v198_v32 = vmul.f32 %v190_v24, %v150_v49 }
  0x59   :  { %v199_v34 = vmul.f32 %v191_v27, %v151_v52 }
  0x5a   :  { %v203_v33 = vadd.f32 %v202_v29, %v196_v25  ;;  %v200_v36 = vmul.f32 %v192_v30, %v152_v55 }
  0x5c   :  { %v204_v31 = vadd.f32 %v203_v33, %v197_v28 }
  0x5e   :  { %v205_v37 = vadd.f32 %v204_v31, %v198_v32 }
  0x60   :  { %v206_v35 = vadd.f32 %v205_v37, %v199_v34 }
  0x62   :  { %v207_v39 = vadd.f32 %v206_v35, %v200_v36 }
  0x64   :  { %214 = vst [vmem:[#allocation7] sm:$0xff] %v207_v39 }
  0x65   :  { %335 = shalt.err (!%p332_p0)
}
  0x66   :  { %224 = dma.vmem_to_hbm [thread:$0]  %s222_s1, 128, %s427_s2, [#allocation4]  }
  0x67   :  { %348 = dma.done.wait [#allocation4], 128  }
  0x68   :  { %349 = vsyncadd [#allocation4], 4294967168 }
  0x69   :  { %228 = vsyncpa [#allocation3], 1 }
  0x6a   :  { %229 = vsyncpa [#allocation6], 1 }
  0x6b   :  { %230 = vsyncpa [#allocation4], 1 }

</bundles_post_ra>
